<compile_context>
chip_gen: v6e
topology: v6e:2x2x1
jax: 0.10.0
libtpu: 0.0.40
codegen_flags: <defaults>
</compile_context>

<pallas_src>
import math

import jax
import jax.numpy as jnp
from jax import lax
from jax.experimental import pallas as pl
from jax.experimental.pallas import tpu as pltpu


_INV_SQRT2 = 1.0 / math.sqrt(2.0)


def _round_up(x, m):
    return (x + m - 1) // m * m


def _check_single_buffer():
    """Can this JAX build express single-buffered (non-pipelined) blocks?"""
    try:
        pl.BlockSpec((8, 128), lambda i: (0, 0), pipeline_mode=pl.Buffered(1))
        return True
    except Exception:
        return False


_HAS_SINGLE_BUFFER = _check_single_buffer()


def _vmem_capacity_bytes():
    """Physical per-TensorCore VMEM; conservative v7x default if query fails."""
    try:
        return int(pltpu.get_tpu_info().vmem_capacity_bytes)
    except Exception:
        return 64 * 1024 * 1024


def _const_spec(shape, index_map, single_buffer):
    """BlockSpec for a block whose index never changes over the grid.

    Pallas only re-issues the DMA when the block index changes, so these blocks
    are fetched from HBM exactly once per call; `single_buffer` additionally
    drops the unused second pipeline buffer to halve their VMEM footprint.
    """
    if single_buffer and _HAS_SINGLE_BUFFER:
        return pl.BlockSpec(shape, index_map, pipeline_mode=pl.Buffered(1))
    return pl.BlockSpec(shape, index_map)


def _gelu_to(h, dtype):
    """Exact (erf-based) GELU, matching torch.nn.GELU()'s default.

    For sub-32-bit weight dtypes the GELU is evaluated in that dtype (bf16 VALU /
    EUP path on v6e/v7x) which halves the elementwise cost and already produces
    the dtype the second MXU matmul wants; f32 weights keep the f32 path.
    """
    if jnp.dtype(dtype).itemsize < 4:
        h = h.astype(dtype)
    g = 0.5 * h * (1.0 + lax.erf(h * _INV_SQRT2))
    return g.astype(dtype)


# ---------------------------------------------------------------------------
# Kernels
# ---------------------------------------------------------------------------

def _mlp_kernel_resident(x_ref, w1_ref, b1_ref, w2_ref, b2_ref, o_ref):
    """Full W1/W2 resident in VMEM; grid = (row tiles,).

      o_i = GELU(x_i @ W1 + b1) @ W2 + b2        (Dropout(p=0) == identity)

    No accumulator scratch and no per-slab read-modify-write.
    """
    h = jnp.dot(x_ref[...], w1_ref[...], preferred_element_type=jnp.float32)
    h = h + b1_ref[...].astype(jnp.float32)
    g = _gelu_to(h, w2_ref.dtype)
    o = jnp.dot(g, w2_ref[...], preferred_element_type=jnp.float32)
    o_ref[...] = (o + b2_ref[...].astype(jnp.float32)).astype(o_ref.dtype)


def _mlp_kernel_slabbed(x_ref, w1_ref, b1_ref, w2_ref, b2_ref, o_ref, acc_ref):
    """Fallback: hidden dim streamed in slabs; grid = (row tiles, hidden slabs).

      h_k  = GELU(x_i @ W1[:, k] + b1[k])
      acc += h_k @ W2[k, :]            ;  o_i = acc + b2  on the last slab.
    """
    k = pl.program_id(1)

    @pl.when(k == 0)
    def _():
        acc_ref[...] = jnp.zeros_like(acc_ref)

    h = jnp.dot(x_ref[...], w1_ref[...], preferred_element_type=jnp.float32)
    h = h + b1_ref[...].astype(jnp.float32)
    g = _gelu_to(h, w2_ref.dtype)
    acc_ref[...] += jnp.dot(g, w2_ref[...], preferred_element_type=jnp.float32)

    @pl.when(k == pl.num_programs(1) - 1)
    def _():
        o_ref[...] = (acc_ref[...] + b2_ref[...].astype(jnp.float32)).astype(o_ref.dtype)


# ---------------------------------------------------------------------------
# Tiling helpers
# ---------------------------------------------------------------------------

def _pick_row_tile(M, target):
    """Row tile: multiple of 8 (sublane); prefer one that divides M so the
    wrapper never needs a pad + slice HBM pass over x / the output."""
    target = max(8, (target // 8) * 8)
    M8 = _round_up(M, 8)
    if M8 <= target:
        return M8                       # single (sublane-padded) row tile
    if M % target == 0:
        return target
    for cand in range(target, 63, -8):  # nearest multiple-of-8 divisor of M
        if M % cand == 0:
            return cand
    return target                       # fall back to padding the tail tile


def _pick_hidden_tile(H, max_th):
    """Hidden slab for the streaming path: must be a multiple of 128 (lane dim
    of the W1/b1 blocks) that divides H, else the full H."""
    if H <= max_th or H % 128 != 0:
        return H
    for cand in range(max_th, 127, -128):
        if H % cand == 0:
            return cand
    return H


# ---------------------------------------------------------------------------
# Wrapper
# ---------------------------------------------------------------------------

def mlp_pallas(x, w1, b1, w2, b2, *, tm=None, th=None, _force_slab=False):
    """x: (B, N, C); w1: (C, H); b1: (H,); w2: (H, O); b2: (O,). Returns (B, N, O)."""
    B, N, C = x.shape
    H = w1.shape[1]
    O = w2.shape[1]
    M = B * N

    itm = jnp.dtype(x.dtype).itemsize
    wtm = jnp.dtype(w1.dtype).itemsize

    cap = _vmem_capacity_bytes()
    budget = int(0.75 * cap)            # leave headroom below physical VMEM

    # Row tile: >=256 (v5e) / >=512 (v6e/v7x). 512 is a multiple of both 128
    # (v5e MXU) and 256 (v6e/v7x MXU), so use it as the single default.
    tm = _pick_row_tile(M, 512 if tm is None else tm)

    def resident_bytes(tm_, wbuf):
        return (2 * tm_ * C * itm + 2 * tm_ * O * itm            # x / out tiles (double-buffered)
                + wbuf * ((C * H + H) + (H * O + O)) * wtm        # resident weights + biases
                + tm_ * H * 4 + tm_ * H * wtm                     # f32 hidden + GELU-dtype copy
                + tm_ * O * 4                                     # f32 fc2 result
                + (1 << 20))                                      # compiler-internal scratch

    def slab_bytes(tm_, th_):
        return (2 * tm_ * C * itm + 2 * tm_ * O * itm
                + 2 * (C * th_ + th_) * wtm + 2 * (th_ * O + O) * wtm
                + tm_ * O * 4                                     # accumulator scratch
                + tm_ * th_ * 4 + tm_ * th_ * wtm
                + (1 << 20))

    # Prefer keeping the full W1/W2 resident in VMEM (fetched from HBM exactly
    # once per call); stream hidden-dim slabs only when they cannot fit.
    wbuf = 2                                            # double-buffered (default specs)
    resident_ok = resident_bytes(128, wbuf) <= budget
    if not resident_ok and _HAS_SINGLE_BUFFER:
        wbuf = 1                                        # single-buffer the constant blocks
        resident_ok = resident_bytes(128, wbuf) <= budget
    use_resident = resident_ok and (th is None or th >= H) and not _force_slab

    if use_resident:
        while resident_bytes(tm, wbuf) > budget and tm > 128:
            tm = _pick_row_tile(M, max(128, tm // 2))
        th = H
        est = resident_bytes(tm, wbuf)
    else:
        if th is None:
            max_th = 1024
            th = _pick_hidden_tile(H, max_th)
            while slab_bytes(tm, th) > budget and max_th > 128:
                max_th //= 2
                th = _pick_hidden_tile(H, max_th)
        assert H % th == 0, "hidden tile must divide hidden_features"
        while slab_bytes(tm, th) > budget and tm > 128:
            tm = _pick_row_tile(M, max(128, tm // 2))
        est = slab_bytes(tm, th)

    M_pad = _round_up(M, tm)
    x2 = x.reshape(M, C)
    if M_pad != M:
        # Only hit when no multiple-of-8 divisor of M is usable (e.g. ragged M);
        # for production token counts tm divides M and this pad/slice is skipped.
        x2 = jnp.pad(x2, ((0, M_pad - M), (0, 0)))
    b1_2 = b1.reshape(1, H)
    b2_2 = b2.reshape(1, O)

    # NOTE: output lane density -- the (tm, O) tile uses the full O as its lane
    # extent; for typical transformer dims O is a multiple of 128 and stores are
    # unmasked. Odd O falls back to masked stores (only matters for toy shapes).

    if use_resident:
        grid = (M_pad // tm,)
        in_specs = [
            pl.BlockSpec((tm, C), lambda i: (i, 0)),                       # x row tile
            _const_spec((C, H), lambda i: (0, 0), wbuf == 1),              # W1 (resident)
            _const_spec((1, H), lambda i: (0, 0), wbuf == 1),              # b1
            _const_spec((H, O), lambda i: (0, 0), wbuf == 1),              # W2 (resident)
            _const_spec((1, O), lambda i: (0, 0), wbuf == 1),              # b2
        ]
        out_specs = pl.BlockSpec((tm, O), lambda i: (i, 0))
        scratch_shapes = []
        kernel = _mlp_kernel_resident
        dims = ("parallel",)
    else:
        grid = (M_pad // tm, H // th)
        in_specs = [
            pl.BlockSpec((tm, C), lambda i, k: (i, 0)),                    # x row tile
            pl.BlockSpec((C, th), lambda i, k: (0, k)),                    # W1 hidden slab
            pl.BlockSpec((1, th), lambda i, k: (0, k)),                    # b1 hidden slab
            pl.BlockSpec((th, O), lambda i, k: (k, 0)),                    # W2 hidden slab
            pl.BlockSpec((1, O), lambda i, k: (0, 0)),                     # b2 (constant)
        ]
        out_specs = pl.BlockSpec((tm, O), lambda i, k: (i, 0))
        scratch_shapes = [pltpu.VMEM((tm, O), jnp.float32)]
        kernel = _mlp_kernel_slabbed
        dims = ("parallel", "arbitrary")

    # Generation-aware scoped-VMEM request: actual buffer plan + headroom,
    # never above 0.9 * physical capacity (v7x: 64 MiB per TensorCore).
    vmem_limit = int(min(int(0.9 * cap), max(est + (4 << 20), 16 << 20)))

    out = pl.pallas_call(
        kernel,
        out_shape=jax.ShapeDtypeStruct((M_pad, O), x.dtype),
        grid_spec=pltpu.PrefetchScalarGridSpec(
            num_scalar_prefetch=0,
            grid=grid,
            in_specs=in_specs,
            out_specs=out_specs,
            scratch_shapes=scratch_shapes,
        ),
        compiler_params=pltpu.CompilerParams(
            dimension_semantics=dims,
            vmem_limit_bytes=vmem_limit,
        ),
    )(x2, w1, b1_2, w2, b2_2)

    if M_pad != M:
        out = out[:M]
    return out.reshape(B, N, O)


# ---------------------------------------------------------------------------
# Parameter init (mimics nn.Linear) and pure-JAX reference
# ---------------------------------------------------------------------------

def init_mlp_params(key, in_features, hidden_features, out_features, dtype=jnp.float32):
    """nn.Linear-style uniform(-1/sqrt(fan_in), 1/sqrt(fan_in)); weights stored (in, out)."""
    k1, k2, k3, k4 = jax.random.split(key, 4)
    lim1 = 1.0 / math.sqrt(in_features)
    lim2 = 1.0 / math.sqrt(hidden_features)
    w1 = jax.random.uniform(k1, (in_features, hidden_features), dtype, -lim1, lim1)
    b1 = jax.random.uniform(k2, (hidden_features,), dtype, -lim1, lim1)
    w2 = jax.random.uniform(k3, (hidden_features, out_features), dtype, -lim2, lim2)
    b2 = jax.random.uniform(k4, (out_features,), dtype, -lim2, lim2)
    return w1, b1, w2, b2


def mlp_reference(x, w1, b1, w2, b2):
    h = jnp.einsum("bnc,ch->bnh", x, w1) + b1
    h = 0.5 * h * (1.0 + lax.erf(h * _INV_SQRT2))
    return jnp.einsum("bnh,ho->bno", h, w2) + b2


if __name__ == "__main__":
    # Small shapes consistent with the module: batch=2, seq=8, in=32, hidden=64, out=32.
    B, N, C, H = 2, 8, 32, 64
    key = jax.random.PRNGKey(0)
    kx, kp = jax.random.split(key)
    x = jax.random.normal(kx, (B, N, C), jnp.float32)
    w1, b1, w2, b2 = init_mlp_params(kp, C, H, C)

    # 1) Resident-weights fast path (weights fit VMEM at this size).
    y = jax.block_until_ready(mlp_pallas(x, w1, b1, w2, b2))
    y_ref = mlp_reference(x, w1, b1, w2, b2)
    assert y.shape == (B, N, C)
    assert jnp.allclose(y, y_ref, atol=2e-5, rtol=2e-5), "mismatch (resident path)"

    # 2) Ragged row count -> exercises the padded tail-tile fallback.
    x_odd = jax.random.normal(kx, (1, 9, C), jnp.float32)
    y_odd = jax.block_until_ready(mlp_pallas(x_odd, w1, b1, w2, b2))
    y_odd_ref = mlp_reference(x_odd, w1, b1, w2, b2)
    assert y_odd.shape == (1, 9, C)
    assert jnp.allclose(y_odd, y_odd_ref, atol=2e-5, rtol=2e-5), "mismatch (padded rows)"

    # 3) Streaming hidden-slab fallback path (forced, for coverage).
    y_slab = jax.block_until_ready(mlp_pallas(x, w1, b1, w2, b2, _force_slab=True))
    assert jnp.allclose(y_slab, y_ref, atol=2e-5, rtol=2e-5), "mismatch (slab path)"

    print("KERNEL_OK")
</pallas_src>

<mosaic_0001>
module attributes {stable_mosaic.version = 11 : i64} {
  func.func @_mlp_kernel_resident(%arg0: i32, %arg1: memref<16x32xf32, #tpu.memory_space<vmem>>, %arg2: memref<32x64xf32, #tpu.memory_space<vmem>>, %arg3: memref<1x64xf32, #tpu.memory_space<vmem>>, %arg4: memref<64x32xf32, #tpu.memory_space<vmem>>, %arg5: memref<1x32xf32, #tpu.memory_space<vmem>>, %arg6: memref<16x32xf32, #tpu.memory_space<vmem>>) attributes {dimension_semantics = [#tpu.dimension_semantics<parallel>], iteration_bounds = array<i64: 1>, scalar_prefetch = 0 : i64, scratch_operands = 0 : i64, tpu.core_type = #tpu.core_type<tc>, window_params = [{transform_indices = @transform_0, window_bounds = array<i64: 16, 32>}, {pipeline_mode = #tpu.pipeline_mode<synchronous>, transform_indices = @transform_1, window_bounds = array<i64: 32, 64>}, {pipeline_mode = #tpu.pipeline_mode<synchronous>, transform_indices = @transform_2, window_bounds = array<i64: 1, 64>}, {pipeline_mode = #tpu.pipeline_mode<synchronous>, transform_indices = @transform_3, window_bounds = array<i64: 64, 32>}, {pipeline_mode = #tpu.pipeline_mode<synchronous>, transform_indices = @transform_4, window_bounds = array<i64: 1, 32>}, {transform_indices = @transform_5, window_bounds = array<i64: 16, 32>}]} {
    %c0 = arith.constant 0 : index
    %c0_0 = arith.constant 0 : index
    %0 = vector.load %arg1[%c0, %c0_0] : memref<16x32xf32, #tpu.memory_space<vmem>>, vector<16x32xf32>
    %c0_1 = arith.constant 0 : index
    %c0_2 = arith.constant 0 : index
    %1 = vector.load %arg2[%c0_1, %c0_2] : memref<32x64xf32, #tpu.memory_space<vmem>>, vector<32x64xf32>
    %cst = arith.constant dense<0.000000e+00> : vector<16x64xf32>
    %2 = tpu.matmul %0, %1, %cst {dimension_numbers = #tpu.dot_dimension_numbers<[1], [0], [0], [1], [0, 0, 1, 1], [], []>} : vector<16x32xf32>, vector<32x64xf32>, vector<16x64xf32> -> vector<16x64xf32>
    %c0_3 = arith.constant 0 : index
    %c0_4 = arith.constant 0 : index
    %3 = vector.load %arg3[%c0_3, %c0_4] : memref<1x64xf32, #tpu.memory_space<vmem>>, vector<1x64xf32>
    %4 = vector.broadcast %3 : vector<1x64xf32> to vector<16x64xf32>
    %5 = arith.addf %2, %4 : vector<16x64xf32>
    %cst_5 = arith.constant 5.000000e-01 : f32
    %6 = vector.broadcast %cst_5 : f32 to vector<16x64xf32>
    %7 = arith.mulf %6, %5 : vector<16x64xf32>
    %cst_6 = arith.constant 0.707106769 : f32
    %8 = vector.broadcast %cst_6 : f32 to vector<16x64xf32>
    %9 = arith.mulf %5, %8 : vector<16x64xf32>
    %10 = math.erf %9 : vector<16x64xf32>
    %cst_7 = arith.constant 1.000000e+00 : f32
    %11 = vector.broadcast %cst_7 : f32 to vector<16x64xf32>
    %12 = arith.addf %11, %10 : vector<16x64xf32>
    %13 = arith.mulf %7, %12 : vector<16x64xf32>
    %c0_8 = arith.constant 0 : index
    %c0_9 = arith.constant 0 : index
    %14 = vector.load %arg4[%c0_8, %c0_9] : memref<64x32xf32, #tpu.memory_space<vmem>>, vector<64x32xf32>
    %cst_10 = arith.constant dense<0.000000e+00> : vector<16x32xf32>
    %15 = tpu.matmul %13, %14, %cst_10 {dimension_numbers = #tpu.dot_dimension_numbers<[1], [0], [0], [1], [0, 0, 1, 1], [], []>} : vector<16x64xf32>, vector<64x32xf32>, vector<16x32xf32> -> vector<16x32xf32>
    %c0_11 = arith.constant 0 : index
    %c0_12 = arith.constant 0 : index
    %16 = vector.load %arg5[%c0_11, %c0_12] : memref<1x32xf32, #tpu.memory_space<vmem>>, vector<1x32xf32>
    %17 = vector.broadcast %16 : vector<1x32xf32> to vector<16x32xf32>
    %18 = arith.addf %15, %17 : vector<16x32xf32>
    %c0_13 = arith.constant 0 : index
    %c0_14 = arith.constant 0 : index
    %19 = vector.load %arg6[%c0_13, %c0_14] : memref<16x32xf32, #tpu.memory_space<vmem>>, vector<16x32xf32>
    tpu.vector_store %arg6[%c0_13, %c0_14], %18 {strides = array<i32>} : memref<16x32xf32, #tpu.memory_space<vmem>>, vector<16x32xf32>,
    return
  }
  func.func @transform_0(%arg0: i32) -> (i32, i32) {
    %c0_i32 = arith.constant 0 : i32
    %c0_i32_0 = arith.constant 0 : i32
    return %arg0, %c0_i32 : i32, i32
  }
  func.func @transform_1(%arg0: i32) -> (i32, i32) {
    %c0_i32 = arith.constant 0 : i32
    %c0_i32_0 = arith.constant 0 : i32
    %c0_i32_1 = arith.constant 0 : i32
    return %c0_i32, %c0_i32_0 : i32, i32
  }
  func.func @transform_2(%arg0: i32) -> (i32, i32) {
    %c0_i32 = arith.constant 0 : i32
    %c0_i32_0 = arith.constant 0 : i32
    %c0_i32_1 = arith.constant 0 : i32
    return %c0_i32, %c0_i32_0 : i32, i32
  }
  func.func @transform_3(%arg0: i32) -> (i32, i32) {
    %c0_i32 = arith.constant 0 : i32
    %c0_i32_0 = arith.constant 0 : i32
    %c0_i32_1 = arith.constant 0 : i32
    return %c0_i32, %c0_i32_0 : i32, i32
  }
  func.func @transform_4(%arg0: i32) -> (i32, i32) {
    %c0_i32 = arith.constant 0 : i32
    %c0_i32_0 = arith.constant 0 : i32
    %c0_i32_1 = arith.constant 0 : i32
    return %c0_i32, %c0_i32_0 : i32, i32
  }
  func.func @transform_5(%arg0: i32) -> (i32, i32) {
    %c0_i32 = arith.constant 0 : i32
    %c0_i32_0 = arith.constant 0 : i32
    return %arg0, %c0_i32 : i32, i32
  }
}

</mosaic_0001>

<bundles_post_ra>
// kernel: tpu_custom_call.1
= control target key start
LH: loop header
LB: loop body
LE: loop exit
PB: predicated region body
PF: predicated region fallthrough
CT: control target
= control target key end

     0   :  { %vm34_vm0 = vcmask 261120   ;;  %s410_s0 = inlined_call_operand.vmem [shape: f32[16,32], index: 0, kind: input, shape index: {}]   ;;  %s411_s1 = inlined_call_operand.vmem [shape: f32[32,64], index: 1, kind: input, shape index: {}]   ;;  %s412_s2 = inlined_call_operand.vmem [shape: f32[1,64], index: 2, kind: input, shape index: {}]   ;;  %s413_s3 = inlined_call_operand.vmem [shape: f32[64,32], index: 3, kind: input, shape index: {}]   ;;  %s414_s4 = inlined_call_operand.vmem [shape: f32[1,32], index: 4, kind: input, shape index: {}]   ;;  %s415_s5 = inlined_call_operand.hbm [shape: f32[16,32], index: 5, kind: output, shape index: {}]  }
   0x1   :  { %v26_v0 = vld [vmem:[%s411_s1 + $0x18] sm:$0xff]  ;;  %v25_v1 = vld [vmem:[%s411_s1 + $0x10] sm:$0xff]  ;;  %v21_v2 = vld [vmem:[%s410_s0] sm:$0xff] }
   0x2   :  { %263 = vmatprep.subr.mxu0 %v26_v0  ;;  %v24_v3 = vld [vmem:[%s411_s1 + $0x8] sm:$0xff]  ;;  %271 = vmatprep.mubr.msk.f32.mxu0 %vm34_vm0, %v21_v2 }
   0x3   :  { %264 = vmatpush3.msra.mxu0 %v26_v0 }
   0x4   :  { %10 = vsyncpa [#allocation3], 0  ;;  %265 = vmatprep.subr.mxu0 %v25_v1  ;;  %v23_v4 = vld [vmem:[%s411_s1] sm:$0xff]  ;;  %v22_v5 = vld [vmem:[%s410_s0 + $0x8] sm:$0xff]  ;;  %vm141_vm1 = vcmask 523264   ;;  %s322_s21 = smov [#allocation2]  }
   0x5   :  { %266 = vmatpush3.msra.mxu0 %v25_v1  ;;  %v133_v6 = vld [vmem:[%s413_s3 + $0x38] sm:$0xff]  ;;  %v132_v7 = vld [vmem:[%s413_s3 + $0x30] sm:$0xff]  ;;  %v131_v8 = vld [vmem:[%s413_s3 + $0x28] sm:$0xff]  ;;  %s230_s22 = sshll.u32 %s322_s21, 4  ;;  %s231_s22 = int_to_ptr.vmem [resolvable:$true] %s230_s22 }
   0x6   :  { %267 = vmatprep.subr.mxu0 %v24_v3  ;;  %274 = vmatprep.subr.mxu1 %v133_v6  ;;  %v130_v9 = vld [vmem:[%s413_s3 + $0x20] sm:$0xff]  ;;  %v129_v10 = vld [vmem:[%s413_s3 + $0x18] sm:$0xff]  ;;  %v128_v11 = vld [vmem:[%s413_s3 + $0x10] sm:$0xff]  ;;  %s300_s23 = scalar_lea.vmem %s231_s22, 256  ;;  %p305_p1 = scmp.lt.s32.totalorder %s231_s22, %s231_s22 }
   0x7   :  { %268 = vmatpush3.msra.mxu0 %v24_v3  ;;  %275 = vmatpush3.msra.mxu1 %v133_v6  ;;  %v127_v12 = vld [vmem:[%s413_s3 + $0x8] sm:$0xff]  ;;  %v126_v13 = vld [vmem:[%s413_s3] sm:$0xff]  ;;  %p301_p0 = scmp.ne.s32.totalorder %s231_s22, %s300_s23  ;;  %p306_p2 = scmp.lt.s32.totalorder %s300_s23, %s300_s23 }
   0x8   :  { %269 = vmatprep.subr.mxu0 %v23_v4  ;;  %276 = vmatprep.subr.mxu1 %v132_v7  ;;  %v241_v14 = vld [vmem:[%s412_s2] ss:$0 sm:$0xff] }
   0x9   :  { %270 = vmatpush3.msra.mxu0 %v23_v4  ;;  %277 = vmatpush3.msra.mxu1 %v132_v7  ;;  %v244_v29 = vld [vmem:[%s414_s4] ss:$0 sm:$0xff]  ;;  %p307_p3 = por %p306_p2, %p305_p1 }
   0xa   :  { %272 = vmatmul.mubr.msk.f32.vlgmr.msra.gmra.mxu0 %vm34_vm0, %v22_v5  ;;  %278 = vmatprep.subr.mxu1 %v131_v8 }
   0xb   :  { %279 = vmatpush3.msra.mxu1 %v131_v8  ;;  %p308_p4 = pnand %p307_p3, %p301_p0 }
   0xc   :  { %280 = vmatprep.subr.mxu1 %v130_v9 }
   0xd   :  { %281 = vmatpush3.msra.mxu1 %v130_v9 }
   0xe   :  { %282 = vmatprep.subr.mxu1 %v129_v10 }
   0xf   :  { %283 = vmatpush3.msra.mxu1 %v129_v10 }
  0x10   :  { %284 = vmatprep.subr.mxu1 %v128_v11 }
  0x11   :  { %285 = vmatpush3.msra.mxu1 %v128_v11 }
  0x12   :  { %286 = vmatprep.subr.mxu1 %v127_v12 }
  0x13   :  { %287 = vmatpush3.msra.mxu1 %v127_v12 }
  0x14   :  { %288 = vmatprep.subr.mxu1 %v126_v13 }
  0x15   :  { %289 = vmatpush3.msra.mxu1 %v126_v13 }
  0xca   :  { %v273_v15 = vpop.f32.mrf.mxu0 }
  0xcb   :  { %v113_v16 = vadd.f32 %v273_v15, %v241_v14 }
  0xcc   :  { %v107_v17 = vpop.f32.mrf.mxu0 }
  0xcd   :  { %v119_v18 = vmul.f32 0.70710677, %v113_v16  ;;  %v108_v19 = vadd.f32 %v241_v14, %v107_v17  ;;  %v117_v26 = vmul.f32 0.5, %v113_v16 }
  0xcf   :  { %296 = verf.f32 %v119_v18  ;;  %v118_v20 = vmul.f32 0.70710677, %v108_v19  ;;  %v116_v24 = vmul.f32 0.5, %v108_v19 }
  0xd1   :  { %298 = verf.f32 %v118_v20 }
  0xdc   :  { %v297_v21 = vpop.eup %296 }
  0xdd   :  { %v123_v23 = vadd.f32 1.0, %v297_v21 }
  0xde   :  { %v299_v22 = vpop.eup %298 }
  0xdf   :  { %v122_v25 = vadd.f32 1.0, %v299_v22  ;;  %v125_v28 = vmul.f32 %v123_v23, %v117_v26 }
  0xe1   :  { %v124_v27 = vmul.f32 %v122_v25, %v116_v24 }
  0xe3   :  { %290 = vmatprep.mubr.msk.f32.mxu1 %vm141_vm1, %v124_v27 }
  0xe4   :  { %291 = vmatmul.mubr.msk.f32.vlgmr.msra.gmra.mxu1 %vm141_vm1, %v125_v28 }
 0x1a4   :  { %v292_v30 = vpop.f32.mrf.mxu1 }
 0x1a5   :  { %v220_v31 = vadd.f32 %v292_v30, %v244_v29 }
 0x1a6   :  { %v214_v32 = vpop.f32.mrf.mxu1 }
 0x1a7   :  { %224 = vst.msk [vmem:[#allocation2 + $0x8] sm:$0xff] %vm34_vm0, %v220_v31  ;;  %v215_v33 = vadd.f32 %v244_v29, %v214_v32 }
 0x1a9   :  { %223 = vst.msk [vmem:[#allocation2] sm:$0xff] %vm34_vm0, %v215_v33 }
 0x1aa   :  { %311 = shalt.err (!%p308_p4)
}
 0x1ab   :  { %s323_s24 = smov 128   ;;  %s324_s4 = smov 8  }
 0x1ac   :  { %236 = dma.vmem_to_hbm [thread:$0]  %s231_s22, 256, %s415_s5, [#allocation3], %s323_s24, %s323_s24, %s324_s4  }
 0x1ad   :  { %320 = dma.done.wait [#allocation3], 256  }
 0x1ae   :  { %321 = vsyncadd [#allocation3], 4294967040 }
 0x1af   :  { %240 = vsyncpa [#allocation3], 1 }

</bundles_post_ra>
